<compile_context>
chip_gen: v7x
topology: tpu7x:2x2x1
jax: 0.10.0
libtpu: 0.0.40
codegen_flags: <defaults>
</compile_context>

<pallas_src>
import functools

import jax
import jax.numpy as jnp
from jax.experimental import pallas as pl
from jax.experimental.pallas import tpu as pltpu


# --------------------------- Pallas kernels --------------------------------

def _proj_kernel(x_ref, rpad_ref, u_ref, vb_ref, wqkv_ref,
                 pos_ref, qu_ref, k_ref, v_ref,
                 *, num_heads, head_dim):
    """Per-batch QKV projection + zero-padded positional scores.

    The 1/sqrt(dim) scale is already folded into the Q columns of wqkv and
    into u_ref / vb_ref by the wrapper, so no score-matrix scaling is needed.
    """
    H, hd = num_heads, head_dim
    hh = H * hd
    x = x_ref[0]                                                    # [T, D]
    qkv = jnp.dot(x, wqkv_ref[...],
                  preferred_element_type=jnp.float32)               # [T, 3*H*hd]

    def heads(base):
        return jnp.stack(
            [qkv[:, base + h * hd: base + (h + 1) * hd] for h in range(H)],
            axis=0)                                                 # [H, T, hd]

    q = heads(0)
    k = heads(hh)
    v = heads(2 * hh)

    qu = q + u_ref[...]                                             # [H, T, hd]
    qv = q + vb_ref[...]                                            # [H, T, hd]

    # Head-batched positional scores against [0; R] -> zero-padded scores,
    # so the rel-shift later is just a row-major re-chunk + drop first row.
    pos_ref[0] = jnp.einsum("htd,hpd->htp", qv, rpad_ref[...],
                            preferred_element_type=jnp.float32)     # [H, T, P+1]
    qu_ref[0] = qu
    k_ref[0] = k
    v_ref[0] = v


def _attn_ffn_kernel(pos_ref, qu_ref, k_ref, v_ref, x_ref, wout_ref,
                     w1_ref, b1_ref, w2_ref, b2_ref,
                     g1_ref, beta1_ref, g2_ref, beta2_ref,
                     y_ref, attn_ref, ctx_ref,
                     *, num_heads, head_dim, eps):
    """Scores + softmax + context + out_proj + residual/LN + FFN + residual/LN."""
    H, hd = num_heads, head_dim

    # Rel-shifted (and pre-scaled) positional scores: drop the first row of
    # the [T+1, P] re-chunked view (exact Transformer-XL view trick).
    pos_full = pos_ref[0]                                           # [H, T+1, S]
    pos = pos_full[:, 1:, :]                                        # [H, T, S]

    qu = qu_ref[0]                                                  # [H, T, hd]
    k = k_ref[0]                                                    # [H, S, hd]
    v = v_ref[0]                                                    # [H, S, hd]

    # Content scores, head-batched (scale already folded into qu).
    content = jnp.einsum("htd,hsd->hts", qu, k,
                         preferred_element_type=jnp.float32)        # [H, T, S]
    s = content + pos

    # Softmax over the source dimension (f32 statistics).
    m = jnp.max(s, axis=-1, keepdims=True)
    e = jnp.exp(s - m)
    denom = jnp.sum(e, axis=-1, keepdims=True)
    # approx=False keeps ~1e-5 agreement with the f32 reference; flip to
    # approx=True to move the divide fully onto the EUP (~1e-3 accuracy).
    p = e * pl.reciprocal(denom, approx=False)
    attn_ref[0] = p                                                 # [H, T, S]

    # Context, head-batched; then ONE consolidated out_proj matmul with a
    # H*hd contraction instead of H tiny [T,hd]x[hd,D] matmuls.
    ctx = jnp.einsum("hts,hsd->htd", p, v,
                     preferred_element_type=jnp.float32)            # [H, T, hd]
    for h in range(H):
        ctx_ref[:, h * hd:(h + 1) * hd] = ctx[h]
    attn_out = jnp.dot(ctx_ref[...], wout_ref[...],
                       preferred_element_type=jnp.float32)          # [T, D]

    def layer_norm(z, g, b):
        mu = jnp.mean(z, axis=-1, keepdims=True)
        var = jnp.mean(jnp.square(z - mu), axis=-1, keepdims=True)
        return (z - mu) * jax.lax.rsqrt(var + eps) * g + b

    x = x_ref[0]                                                    # [T, D]
    n1 = layer_norm(x + attn_out, g1_ref[...], beta1_ref[...])

    f = jnp.dot(n1, w1_ref[...], preferred_element_type=jnp.float32) + b1_ref[...]
    f = jnp.maximum(f, 0.0)                                         # ReLU
    f2 = jnp.dot(f, w2_ref[...], preferred_element_type=jnp.float32) + b2_ref[...]

    y_ref[0] = layer_norm(n1 + f2, g2_ref[...], beta2_ref[...])


# ------------------------------ wrapper -------------------------------------

def transformer_xl_decoder_layer(x_tbd, pos_enc, u_bias, v_bias, params,
                                 *, num_heads, head_dim, eps=1e-5):
    """x_tbd: [T, B, D]; pos_enc: [P, D]; u_bias/v_bias: [H, hd]."""
    T, B, D = x_tbd.shape
    P = pos_enc.shape[0]
    assert P == T, "mems=None path requires pos_len == tgt_len"
    H, hd = num_heads, head_dim
    hh = H * hd
    F = params["w1"].shape[1]
    f32 = jnp.float32
    scale = 1.0 / (D ** 0.5)

    x_btd = jnp.transpose(x_tbd, (1, 0, 2))                          # [B, T, D]

    # Fold the attention scale into the Q columns of Wqkv and into the biases
    # (exact; removes all per-score VALU scaling from the kernels).
    wqkv = params["wqkv"]
    wqkv_eff = jnp.concatenate([wqkv[:, :hh] * scale, wqkv[:, hh:]], axis=1)
    u_s = u_bias.reshape(H, 1, hd).astype(f32) * scale               # [H, 1, hd]
    v_s = v_bias.reshape(H, 1, hd).astype(f32) * scale               # [H, 1, hd]

    # Hoisted, batch-invariant positional projection, per-head, zero row first.
    r = pos_enc @ params["wpos"]                                     # [P, H*hd]
    r_heads = jnp.transpose(r.reshape(P, H, hd), (1, 0, 2))          # [H, P, hd]
    r_pad = jnp.concatenate([jnp.zeros((H, 1, hd), f32), r_heads], axis=1)

    def full(shape):
        return pl.BlockSpec(shape, lambda b, _s=shape: (0,) * len(_s))

    pos_padded, qu, k, v = pl.pallas_call(
        functools.partial(_proj_kernel, num_heads=H, head_dim=hd),
        grid=(B,),
        in_specs=[
            pl.BlockSpec((1, T, D), lambda b: (b, 0, 0)),            # x
            full((H, P + 1, hd)),                                    # [0; R] per head
            full((H, 1, hd)),                                        # u_bias * scale
            full((H, 1, hd)),                                        # v_bias * scale
            full((D, 3 * hh)),                                       # Wqkv^T (Q scaled)
        ],
        out_specs=[
            pl.BlockSpec((1, H, T, P + 1), lambda b: (b, 0, 0, 0)),
            pl.BlockSpec((1, H, T, hd), lambda b: (b, 0, 0, 0)),
            pl.BlockSpec((1, H, T, hd), lambda b: (b, 0, 0, 0)),
            pl.BlockSpec((1, H, T, hd), lambda b: (b, 0, 0, 0)),
        ],
        out_shape=[
            jax.ShapeDtypeStruct((B, H, T, P + 1), f32),
            jax.ShapeDtypeStruct((B, H, T, hd), f32),
            jax.ShapeDtypeStruct((B, H, T, hd), f32),
            jax.ShapeDtypeStruct((B, H, T, hd), f32),
        ],
        compiler_params=pltpu.CompilerParams(
            dimension_semantics=("parallel",)),
    )(x_btd, r_pad, u_s, v_s, wqkv_eff)

    # Metadata-only (contiguous row-major) re-chunk: per (b,h) the [T, P+1]
    # zero-padded scores become [T+1, P]; dropping the first row in kernel 2
    # is exactly the Transformer-XL rel-shift.
    pos_view = pos_padded.reshape(B, H, T + 1, P)

    y_btd, attn_bhts = pl.pallas_call(
        functools.partial(_attn_ffn_kernel, num_heads=H, head_dim=hd, eps=eps),
        grid=(B,),
        in_specs=[
            pl.BlockSpec((1, H, T + 1, P), lambda b: (b, 0, 0, 0)),  # padded pos
            pl.BlockSpec((1, H, T, hd), lambda b: (b, 0, 0, 0)),     # qu
            pl.BlockSpec((1, H, T, hd), lambda b: (b, 0, 0, 0)),     # k
            pl.BlockSpec((1, H, T, hd), lambda b: (b, 0, 0, 0)),     # v
            pl.BlockSpec((1, T, D), lambda b: (b, 0, 0)),            # residual x
            full((hh, D)),                                           # Wout^T
            full((D, F)), full((1, F)),                              # linear1
            full((F, D)), full((1, D)),                              # linear2
            full((1, D)), full((1, D)),                              # norm1 g, b
            full((1, D)), full((1, D)),                              # norm2 g, b
        ],
        out_specs=[
            pl.BlockSpec((1, T, D), lambda b: (b, 0, 0)),
            pl.BlockSpec((1, H, T, T), lambda b: (b, 0, 0, 0)),
        ],
        out_shape=[
            jax.ShapeDtypeStruct((B, T, D), f32),
            jax.ShapeDtypeStruct((B, H, T, T), f32),
        ],
        scratch_shapes=[pltpu.VMEM((T, hh), f32)],                   # ctx [T, H*hd]
        compiler_params=pltpu.CompilerParams(
            dimension_semantics=("parallel",)),
    )(pos_view, qu, k, v, x_btd, params["wout"],
      params["w1"], params["b1"], params["w2"], params["b2"],
      params["g1"], params["beta1"], params["g2"], params["beta2"])

    y = jnp.transpose(y_btd, (1, 0, 2))                              # [T, B, D]
    attn = jnp.transpose(attn_bhts, (2, 3, 0, 1))                    # [T, S, B, H]
    return y, attn


# ------------------------- pure-JAX reference -------------------------------

def reference_forward(x, pos_enc, u_bias, v_bias, params,
                      *, num_heads, head_dim, eps=1e-5):
    T, B, D = x.shape
    P = pos_enc.shape[0]
    H, hd = num_heads, head_dim
    qkv = jnp.einsum("tbd,de->tbe", x, params["wqkv"])
    q, k, v = jnp.split(qkv, 3, axis=-1)
    r = pos_enc @ params["wpos"]
    q = q.reshape(T, B, H, hd)
    k = k.reshape(T, B, H, hd)
    v = v.reshape(T, B, H, hd)
    r = r.reshape(P, H, hd)
    content = jnp.einsum("ibnd,jbnd->ijbn", q + u_bias, k)
    pos_score = jnp.einsum("ibnd,jnd->ijbn", q + v_bias, r)
    zero = jnp.zeros((T, 1, B, H), pos_score.dtype)
    xp = jnp.concatenate([zero, pos_score], axis=1)
    xp = xp.reshape(P + 1, T, B, H)
    pos_score = xp[1:].reshape(T, P, B, H)
    score = (content + pos_score) * (1.0 / D ** 0.5)
    attn = jax.nn.softmax(score, axis=1)
    ctx = jnp.einsum("ijbn,jbnd->ibnd", attn, v).reshape(T, B, H * hd)
    out = ctx @ params["wout"]

    def layer_norm(z, g, b):
        mu = jnp.mean(z, axis=-1, keepdims=True)
        var = jnp.mean(jnp.square(z - mu), axis=-1, keepdims=True)
        return (z - mu) * jax.lax.rsqrt(var + eps) * g + b

    n1 = layer_norm(x + out, params["g1"][0], params["beta1"][0])
    f = jnp.maximum(n1 @ params["w1"] + params["b1"][0], 0.0)
    f2 = f @ params["w2"] + params["b2"][0]
    n2 = layer_norm(n1 + f2, params["g2"][0], params["beta2"][0])
    return n2, attn


# ------------------------------- main ---------------------------------------

def init_params(key, dim, ff_dim, num_heads, head_dim):
    hh = num_heads * head_dim
    ks = jax.random.split(key, 10)

    def w(k, shape, fan_in):
        return jax.random.normal(k, shape, jnp.float32) / jnp.sqrt(float(fan_in))

    return {
        "wqkv": w(ks[0], (dim, 3 * hh), dim),      # qkv_proj.weight^T
        "wpos": w(ks[1], (dim, hh), dim),          # pos_proj.weight^T
        "wout": w(ks[2], (hh, dim), hh),           # out_proj.weight^T
        "w1": w(ks[3], (dim, ff_dim), dim),        # linear1.weight^T
        "b1": 0.1 * jax.random.normal(ks[4], (1, ff_dim), jnp.float32),
        "w2": w(ks[5], (ff_dim, dim), ff_dim),     # linear2.weight^T
        "b2": 0.1 * jax.random.normal(ks[6], (1, dim), jnp.float32),
        "g1": 1.0 + 0.1 * jax.random.normal(ks[7], (1, dim), jnp.float32),
        "beta1": 0.1 * jax.random.normal(ks[8], (1, dim), jnp.float32),
        "g2": 1.0 + 0.05 * jax.random.normal(ks[9], (1, dim), jnp.float32),
        "beta2": jnp.zeros((1, dim), jnp.float32),
    }


if __name__ == "__main__":
    T, B, D = 8, 2, 32          # seq, batch, model dim
    H, hd, F = 2, 16, 64        # heads, head_dim, feedforward_dim

    key = jax.random.PRNGKey(0)
    k_x, k_p, k_u, k_v, k_params = jax.random.split(key, 5)
    x = jax.random.normal(k_x, (T, B, D), jnp.float32)          # [T, B, D]
    pos_enc = jax.random.normal(k_p, (T, D), jnp.float32)       # [P, D]
    u_bias = 0.1 * jax.random.normal(k_u, (H, hd), jnp.float32)
    v_bias = 0.1 * jax.random.normal(k_v, (H, hd), jnp.float32)
    params = init_params(k_params, D, F, H, hd)

    y, attn = transformer_xl_decoder_layer(
        x, pos_enc, u_bias, v_bias, params, num_heads=H, head_dim=hd)
    y, attn = jax.block_until_ready((y, attn))

    y_ref, attn_ref = reference_forward(
        x, pos_enc, u_bias, v_bias, params, num_heads=H, head_dim=hd)

    assert y.shape == (T, B, D) and attn.shape == (T, T, B, H)
    assert jnp.allclose(attn, attn_ref, atol=2e-5, rtol=2e-5), \
        float(jnp.max(jnp.abs(attn - attn_ref)))
    assert jnp.allclose(y, y_ref, atol=2e-4, rtol=2e-4), \
        float(jnp.max(jnp.abs(y - y_ref)))
    print("KERNEL_OK")
</pallas_src>

<mosaic_0001>
module attributes {stable_mosaic.version = 11 : i64} {
  func.func @_proj_kernel(%arg0: i32, %arg1: memref<1x8x32xf32, #tpu.memory_space<vmem>>, %arg2: memref<2x9x16xf32, #tpu.memory_space<vmem>>, %arg3: memref<2x1x16xf32, #tpu.memory_space<vmem>>, %arg4: memref<2x1x16xf32, #tpu.memory_space<vmem>>, %arg5: memref<32x96xf32, #tpu.memory_space<vmem>>, %arg6: memref<1x2x8x9xf32, #tpu.memory_space<vmem>>, %arg7: memref<1x2x8x16xf32, #tpu.memory_space<vmem>>, %arg8: memref<1x2x8x16xf32, #tpu.memory_space<vmem>>, %arg9: memref<1x2x8x16xf32, #tpu.memory_space<vmem>>) attributes {dimension_semantics = [#tpu.dimension_semantics<parallel>], iteration_bounds = array<i64: 2>, scalar_prefetch = 0 : i64, scratch_operands = 0 : i64, tpu.core_type = #tpu.core_type<tc>, window_params = [{transform_indices = @transform_0, window_bounds = array<i64: 1, 8, 32>}, {pipeline_mode = #tpu.pipeline_mode<synchronous>, transform_indices = @transform_1, window_bounds = array<i64: 2, 9, 16>}, {pipeline_mode = #tpu.pipeline_mode<synchronous>, transform_indices = @transform_2, window_bounds = array<i64: 2, 1, 16>}, {pipeline_mode = #tpu.pipeline_mode<synchronous>, transform_indices = @transform_3, window_bounds = array<i64: 2, 1, 16>}, {pipeline_mode = #tpu.pipeline_mode<synchronous>, transform_indices = @transform_4, window_bounds = array<i64: 32, 96>}, {transform_indices = @transform_5, window_bounds = array<i64: 1, 2, 8, 9>}, {transform_indices = @transform_6, window_bounds = array<i64: 1, 2, 8, 16>}, {transform_indices = @transform_7, window_bounds = array<i64: 1, 2, 8, 16>}, {transform_indices = @transform_8, window_bounds = array<i64: 1, 2, 8, 16>}]} {
    %c0 = arith.constant 0 : index
    %c0_0 = arith.constant 0 : index
    %c0_1 = arith.constant 0 : index
    %0 = vector.load %arg1[%c0, %c0_0, %c0_1] : memref<1x8x32xf32, #tpu.memory_space<vmem>>, vector<1x8x32xf32>
    %1 = vector.shape_cast %0 : vector<1x8x32xf32> to vector<8x32xf32>
    %c0_2 = arith.constant 0 : index
    %c0_3 = arith.constant 0 : index
    %2 = vector.load %arg5[%c0_2, %c0_3] : memref<32x96xf32, #tpu.memory_space<vmem>>, vector<32x96xf32>
    %cst = arith.constant dense<0.000000e+00> : vector<8x96xf32>
    %3 = tpu.matmul %1, %2, %cst {dimension_numbers = #tpu.dot_dimension_numbers<[1], [0], [0], [1], [0, 0, 1, 1], [], []>} : vector<8x32xf32>, vector<32x96xf32>, vector<8x96xf32> -> vector<8x96xf32>
    %4 = vector.extract_strided_slice %3 {offsets = [0, 0], sizes = [8, 16], strides = [1, 1]} : vector<8x96xf32> to vector<8x16xf32>
    %5 = vector.extract_strided_slice %3 {offsets = [0, 16], sizes = [8, 16], strides = [1, 1]} : vector<8x96xf32> to vector<8x16xf32>
    %6 = vector.shape_cast %4 : vector<8x16xf32> to vector<1x8x16xf32>
    %7 = vector.shape_cast %5 : vector<8x16xf32> to vector<1x8x16xf32>
    %8 = tpu.concatenate %6, %7 in 0 : vector<1x8x16xf32>, vector<1x8x16xf32> -> vector<2x8x16xf32>
    %9 = vector.extract_strided_slice %3 {offsets = [0, 32], sizes = [8, 16], strides = [1, 1]} : vector<8x96xf32> to vector<8x16xf32>
    %10 = vector.extract_strided_slice %3 {offsets = [0, 48], sizes = [8, 16], strides = [1, 1]} : vector<8x96xf32> to vector<8x16xf32>
    %11 = vector.shape_cast %9 : vector<8x16xf32> to vector<1x8x16xf32>
    %12 = vector.shape_cast %10 : vector<8x16xf32> to vector<1x8x16xf32>
    %13 = tpu.concatenate %11, %12 in 0 : vector<1x8x16xf32>, vector<1x8x16xf32> -> vector<2x8x16xf32>
    %14 = vector.extract_strided_slice %3 {offsets = [0, 64], sizes = [8, 16], strides = [1, 1]} : vector<8x96xf32> to vector<8x16xf32>
    %15 = vector.extract_strided_slice %3 {offsets = [0, 80], sizes = [8, 16], strides = [1, 1]} : vector<8x96xf32> to vector<8x16xf32>
    %16 = vector.shape_cast %14 : vector<8x16xf32> to vector<1x8x16xf32>
    %17 = vector.shape_cast %15 : vector<8x16xf32> to vector<1x8x16xf32>
    %18 = tpu.concatenate %16, %17 in 0 : vector<1x8x16xf32>, vector<1x8x16xf32> -> vector<2x8x16xf32>
    %c0_4 = arith.constant 0 : index
    %c0_5 = arith.constant 0 : index
    %c0_6 = arith.constant 0 : index
    %19 = vector.load %arg3[%c0_4, %c0_5, %c0_6] : memref<2x1x16xf32, #tpu.memory_space<vmem>>, vector<2x1x16xf32>
    %20 = vector.broadcast %19 : vector<2x1x16xf32> to vector<2x8x16xf32>
    %21 = arith.addf %8, %20 : vector<2x8x16xf32>
    %c0_7 = arith.constant 0 : index
    %c0_8 = arith.constant 0 : index
    %c0_9 = arith.constant 0 : index
    %22 = vector.load %arg4[%c0_7, %c0_8, %c0_9] : memref<2x1x16xf32, #tpu.memory_space<vmem>>, vector<2x1x16xf32>
    %23 = vector.broadcast %22 : vector<2x1x16xf32> to vector<2x8x16xf32>
    %24 = arith.addf %8, %23 : vector<2x8x16xf32>
    %c0_10 = arith.constant 0 : index
    %c0_11 = arith.constant 0 : index
    %c0_12 = arith.constant 0 : index
    %25 = vector.load %arg2[%c0_10, %c0_11, %c0_12] : memref<2x9x16xf32, #tpu.memory_space<vmem>>, vector<2x9x16xf32>
    "tpu.trace_start"() <{level = 10 : i32, message = "htd,hpd->htp"}> : () -> ()
    %cst_13 = arith.constant dense<0.000000e+00> : vector<2x8x9xf32>
    %26 = tpu.matmul %24, %25, %cst_13 {dimension_numbers = #tpu.dot_dimension_numbers<[2], [2], [1], [1], [0, 0, 0, 1, 1, 1], [0], [0]>} : vector<2x8x16xf32>, vector<2x9x16xf32>, vector<2x8x9xf32> -> vector<2x8x9xf32>
    "tpu.trace_stop"() : () -> ()
    %c0_14 = arith.constant 0 : index
    %c0_15 = arith.constant 0 : index
    %c0_16 = arith.constant 0 : index
    %c0_17 = arith.constant 0 : index
    %27 = vector.load %arg6[%c0_14, %c0_15, %c0_16, %c0_17] : memref<1x2x8x9xf32, #tpu.memory_space<vmem>>, vector<1x2x8x9xf32>
    %28 = vector.shape_cast %27 : vector<1x2x8x9xf32> to vector<2x8x9xf32>
    %29 = vector.shape_cast %26 : vector<2x8x9xf32> to vector<1x2x8x9xf32>
    tpu.vector_store %arg6[%c0_14, %c0_15, %c0_16, %c0_17], %29 {strides = array<i32>} : memref<1x2x8x9xf32, #tpu.memory_space<vmem>>, vector<1x2x8x9xf32>,
    %c0_18 = arith.constant 0 : index
    %c0_19 = arith.constant 0 : index
    %c0_20 = arith.constant 0 : index
    %c0_21 = arith.constant 0 : index
    %30 = vector.load %arg7[%c0_18, %c0_19, %c0_20, %c0_21] : memref<1x2x8x16xf32, #tpu.memory_space<vmem>>, vector<1x2x8x16xf32>
    %31 = vector.shape_cast %30 : vector<1x2x8x16xf32> to vector<2x8x16xf32>
    %32 = vector.shape_cast %21 : vector<2x8x16xf32> to vector<1x2x8x16xf32>
    tpu.vector_store %arg7[%c0_18, %c0_19, %c0_20, %c0_21], %32 {strides = array<i32>} : memref<1x2x8x16xf32, #tpu.memory_space<vmem>>, vector<1x2x8x16xf32>,
    %c0_22 = arith.constant 0 : index
    %c0_23 = arith.constant 0 : index
    %c0_24 = arith.constant 0 : index
    %c0_25 = arith.constant 0 : index
    %33 = vector.load %arg8[%c0_22, %c0_23, %c0_24, %c0_25] : memref<1x2x8x16xf32, #tpu.memory_space<vmem>>, vector<1x2x8x16xf32>
    %34 = vector.shape_cast %33 : vector<1x2x8x16xf32> to vector<2x8x16xf32>
    %35 = vector.shape_cast %13 : vector<2x8x16xf32> to vector<1x2x8x16xf32>
    tpu.vector_store %arg8[%c0_22, %c0_23, %c0_24, %c0_25], %35 {strides = array<i32>} : memref<1x2x8x16xf32, #tpu.memory_space<vmem>>, vector<1x2x8x16xf32>,
    %c0_26 = arith.constant 0 : index
    %c0_27 = arith.constant 0 : index
    %c0_28 = arith.constant 0 : index
    %c0_29 = arith.constant 0 : index
    %36 = vector.load %arg9[%c0_26, %c0_27, %c0_28, %c0_29] : memref<1x2x8x16xf32, #tpu.memory_space<vmem>>, vector<1x2x8x16xf32>
    %37 = vector.shape_cast %36 : vector<1x2x8x16xf32> to vector<2x8x16xf32>
    %38 = vector.shape_cast %18 : vector<2x8x16xf32> to vector<1x2x8x16xf32>
    tpu.vector_store %arg9[%c0_26, %c0_27, %c0_28, %c0_29], %38 {strides = array<i32>} : memref<1x2x8x16xf32, #tpu.memory_space<vmem>>, vector<1x2x8x16xf32>,
    return
  }
  func.func @transform_0(%arg0: i32) -> (i32, i32, i32) {
    %c0_i32 = arith.constant 0 : i32
    %c0_i32_0 = arith.constant 0 : i32
    %c0_i32_1 = arith.constant 0 : i32
    return %arg0, %c0_i32, %c0_i32_0 : i32, i32, i32
  }
  func.func @transform_1(%arg0: i32) -> (i32, i32, i32) {
    %c0_i32 = arith.constant 0 : i32
    %c0_i32_0 = arith.constant 0 : i32
    %c0_i32_1 = arith.constant 0 : i32
    %c0_i32_2 = arith.constant 0 : i32
    return %c0_i32, %c0_i32_0, %c0_i32_1 : i32, i32, i32
  }
  func.func @transform_2(%arg0: i32) -> (i32, i32, i32) {
    %c0_i32 = arith.constant 0 : i32
    %c0_i32_0 = arith.constant 0 : i32
    %c0_i32_1 = arith.constant 0 : i32
    %c0_i32_2 = arith.constant 0 : i32
    return %c0_i32, %c0_i32_0, %c0_i32_1 : i32, i32, i32
  }
  func.func @transform_3(%arg0: i32) -> (i32, i32, i32) {
    %c0_i32 = arith.constant 0 : i32
    %c0_i32_0 = arith.constant 0 : i32
    %c0_i32_1 = arith.constant 0 : i32
    %c0_i32_2 = arith.constant 0 : i32
    return %c0_i32, %c0_i32_0, %c0_i32_1 : i32, i32, i32
  }
  func.func @transform_4(%arg0: i32) -> (i32, i32) {
    %c0_i32 = arith.constant 0 : i32
    %c0_i32_0 = arith.constant 0 : i32
    %c0_i32_1 = arith.constant 0 : i32
    return %c0_i32, %c0_i32_0 : i32, i32
  }
  func.func @transform_5(%arg0: i32) -> (i32, i32, i32, i32) {
    %c0_i32 = arith.constant 0 : i32
    %c0_i32_0 = arith.constant 0 : i32
    %c0_i32_1 = arith.constant 0 : i32
    %c0_i32_2 = arith.constant 0 : i32
    return %arg0, %c0_i32, %c0_i32_0, %c0_i32_1 : i32, i32, i32, i32
  }
  func.func @transform_6(%arg0: i32) -> (i32, i32, i32, i32) {
    %c0_i32 = arith.constant 0 : i32
    %c0_i32_0 = arith.constant 0 : i32
    %c0_i32_1 = arith.constant 0 : i32
    %c0_i32_2 = arith.constant 0 : i32
    return %arg0, %c0_i32, %c0_i32_0, %c0_i32_1 : i32, i32, i32, i32
  }
  func.func @transform_7(%arg0: i32) -> (i32, i32, i32, i32) {
    %c0_i32 = arith.constant 0 : i32
    %c0_i32_0 = arith.constant 0 : i32
    %c0_i32_1 = arith.constant 0 : i32
    %c0_i32_2 = arith.constant 0 : i32
    return %arg0, %c0_i32, %c0_i32_0, %c0_i32_1 : i32, i32, i32, i32
  }
  func.func @transform_8(%arg0: i32) -> (i32, i32, i32, i32) {
    %c0_i32 = arith.constant 0 : i32
    %c0_i32_0 = arith.constant 0 : i32
    %c0_i32_1 = arith.constant 0 : i32
    %c0_i32_2 = arith.constant 0 : i32
    return %arg0, %c0_i32, %c0_i32_0, %c0_i32_1 : i32, i32, i32, i32
  }
}

</mosaic_0001>

<bundles_post_ra>
// kernel: tpu_custom_call.1
= control target key start
LH: loop header
LB: loop body
LE: loop exit
PB: predicated region body
PF: predicated region fallthrough
CT: control target
= control target key end

     0   :  { %s1515_s0 = inlined_call_operand.vmem [shape: f32[2,8,32], index: 0, kind: input, shape index: {}]   ;;  %s1516_s1 = inlined_call_operand.vmem [shape: f32[2,9,16], index: 1, kind: input, shape index: {}]   ;;  %s1517_s2 = inlined_call_operand.vmem [shape: f32[2,1,16], index: 2, kind: input, shape index: {}]   ;;  %s1518_s3 = inlined_call_operand.vmem [shape: f32[2,1,16], index: 3, kind: input, shape index: {}]   ;;  %s1519_s4 = inlined_call_operand.vmem [shape: f32[32,96], index: 4, kind: input, shape index: {}]   ;;  %s1520_s5 = inlined_call_operand.hbm [shape: f32[2,2,8,9], index: 5, kind: output, shape index: {0}]   ;;  %s1521_s6 = inlined_call_operand.hbm [shape: f32[2,2,8,16], index: 6, kind: output, shape index: {1}]   ;;  %s1522_s7 = inlined_call_operand.hbm [shape: f32[2,2,8,16], index: 7, kind: output, shape index: {2}]   ;;  %s1523_s8 = inlined_call_operand.hbm [shape: f32[2,2,8,16], index: 8, kind: output, shape index: {3}]  }
   0x1   :  { %1529 = sst [smem:[#allocation12_spill]] %s1515_s0 }
   0x2   :  { %1530 = sst [smem:[#allocation13_spill]] %s1516_s1 }
   0x3   :  { %1531 = sst [smem:[#allocation14_spill]] %s1517_s2 }
   0x4   :  { %1532 = sst [smem:[#allocation15_spill]] %s1518_s3 }
   0x5   :  { %14 = vsyncpa [#allocation3], 0 }
   0x6   :  { %16 = vsyncpa [#allocation3 + $0x1], 0 }
   0x7   :  { %17 = vsyncpa [#allocation5], 0 }
   0x8   :  { %19 = vsyncpa [#allocation5 + $0x1], 0 }
   0x9   :  { %20 = vsyncpa [#allocation8], 0 }
   0xa   :  { %22 = vsyncpa [#allocation8 + $0x1], 0  ;;  %s1223_s27 = smov 0   ;;  %s1225_s28 = smov 0  }
   0xb   :  { %s1227_s29 = smov 0   ;;  %s1229_s30 = smov 0  }
   0xc LB: > { %s1244_s9 = sadd.s32 4294967295, %s1164_s30   ;;  %s1524_s10 = sadd.s32 4294967294, %s1164_s30   ;;  %s1164_s30 = sphi %s1229_s30, %s1545_s30   ;;  %s1160_s29 = sphi %s1227_s29, %s1544_s29   ;;  %s1156_s28 = sphi %s1225_s28, %s1543_s28   ;;  %s1152_s27 = sphi %s1223_s27, %s1542_s27  }
   0xd   : > { %s1248_s11 = sadd.s32 1, %s1164_s30   ;;  %s145_s12 = sadd.s32 1, %s1160_s29 }
   0xe   : > { %s142_s13 = ssub.s32 %s1164_s30, %s1248_s11  ;;  %p155_p0 = scmp.ne.s32.totalorder %s1160_s29, %s1156_s28 }
   0xf   : > { %p143_p1 = scmp.eq.s32.totalorder %s142_s13, 0  ;;  %p156_p2 = scmp.eq.s32.totalorder %s1244_s9, 1 }
  0x10   : > { %p161_p3 = scmp.ne.s32.totalorder %s1156_s28, %s1152_s27  ;;  %p162_p4 = scmp.eq.s32.totalorder %s1524_s10, 1 }
  0x11   : > { %s1261_s14 = scalar_select %p143_p1, %s1160_s29, %s145_s12  }
  0x12   : > { %p1263_p5 = por %p156_p2, %p155_p0  ;;  %p1267_p6 = por %p162_p4, %p161_p3 }
  0x13   : > { %p863_p7 = scmp.ge.s32.totalorder %s1164_s30, 1  ;;  %p277_p8 = scmp.lt.s32.totalorder %s1164_s30, 3 }
  0x15   : > { %p278_p9 = pnand %p863_p7, %p277_p8 }
  0x16   : > { %v330_v0 = vld [vmem:[%s1519_s4] sm:$0xff] (!%p278_p9)  ;;  %v331_v1 = vld [vmem:[%s1519_s4 + $0x8] sm:$0xff] (!%p278_p9)  ;;  %v332_v2 = vld [vmem:[%s1519_s4 + $0x10] sm:$0xff] (!%p278_p9)  ;;  %v1166_v3 = vmov (!%p278_p9), 0.0|0.0   ;;  %vm1167_vm0 = vmmov (!%p278_p9), 0   ;;  %v1168_v6 = vmov (!%p278_p9), 0.0  }
  0x17   : > { %281 = sbr.rel (%p278_p9) target bundleno = 590 (0x24e), region = 40  ;;  %934 = vmatprep.subr.bf16.mxu0 (!%p278_p9), %v1166_v3  ;;  %v935_v4 = vpack.c.bf16 (!%p278_p9), %v331_v1, %v330_v0  ;;  %v333_v5 = vld [vmem:[%s1519_s4 + $0x18] sm:$0xff] (!%p278_p9)  ;;  %917 = vmatprep.mubr.msk.f32.mxu0 (!%p278_p9), %vm1167_vm0, %v1168_v6  ;;  %p325_p10 = scmp.lt.s32.totalorder (!%p278_p9), %s1244_s9, 1  ;;  %vm448_vm1 = vcmask (!%p278_p9), 130048   ;;  %vm334_vm3 = vcmask (!%p278_p9), 261120  }
  0x18   : > { %s1535_s1 = sld [smem:[#allocation13_spill]] (!%p278_p9)  ;;  %940 = vmatprep.subr.bf16.mxu1 (!%p278_p9), %v1166_v3  ;;  %924 = vmatprep.mubr.msk.f32.mxu1 (!%p278_p9), %vm1167_vm0, %v1168_v6  ;;  %v938_v10 = vpack.c.bf16 (!%p278_p9), %v333_v5, %v332_v2  ;;  %vm942_vm2 = vmpackc.low (!%p278_p9), %vm448_vm1, %vm448_vm1  ;;  %s1536_s0 = sld [smem:[#allocation12_spill]] (!%p278_p9) }
  0x19   : > { %936 = vmatpush3.bf16.msra.mxu0 (!%p278_p9), %v935_v4  ;;  %s1308_s26 = sand.u32 (!%p278_p9), 1, %s1156_s28   ;;  %s1537_s2 = sld [smem:[#allocation14_spill]] (!%p278_p9) }
  0x1a   : > { %937 = vmatprep.subr.bf16.mxu0 (!%p278_p9), %v1166_v3  ;;  %s1311_s12 = sshll.u32 (!%p278_p9), %s1308_s26, 4  ;;  %s1538_s3 = sld [smem:[#allocation15_spill]] (!%p278_p9) }
  0x1b   : > { %s1169_s20 = smov (!%p278_p9), 112   ;;  %s1170_s22 = smov (!%p278_p9), 96  }
  0x1c   : > { %s633_s19 = sand.u32 (!%p278_p9), 1, %s1244_s9  }
  0x1d   : > { %939 = vmatpush3.bf16.msra.mxu0 (!%p278_p9), %v938_v10  ;;  %s1347_s13 = scalar_lea.sflag (!%p278_p9), [#allocation5], %s633_s19 }
  0x1e   : > { %v444_v7 = vld [vmem:[%s1535_s1] sm:$0xff]  ;;  %v445_v8 = vld [vmem:[%s1535_s1 + $0x8] sm:$0x1]  ;;  %s326_s17 = scalar_select %p325_p10, %s1244_s9, 1  ;;  %944 = vmatprep.subr.bf16.mxu0 %v1166_v3  ;;  %v446_v12 = vld [vmem:[%s1535_s1 + $0x10] sm:$0xff] }
  0x1f   : > { %v941_v9 = vpack.c.bf16 %v445_v8, %v444_v7  ;;  %v447_v13 = vld [vmem:[%s1535_s1 + $0x18] sm:$0x1]  ;;  %v870_v15 = vld [vmem:[%s1537_s2] ss:$0 sm:$0xff]  ;;  %v871_v21 = vld [vmem:[%s1537_s2 + $0x1] ss:$0 sm:$0xff] }
  0x20   : > { %s868_s18 = sshll.u32 %s326_s17, 3  ;;  %v945_v14 = vpack.c.bf16 %v447_v13, %v446_v12  ;;  %v872_v16 = vld [vmem:[%s1538_s3] ss:$0 sm:$0xff]  ;;  %v873_v22 = vld [vmem:[%s1538_s3 + $0x1] ss:$0 sm:$0xff]  ;;  %s1171_s17 = smov 64  }
  0x21   : > { %943 = vmatpush3.bf16.xpose.msk.msra.mxu1 %vm942_vm2, %v941_v9  ;;  %s328_s21 = scalar_lea.vmem %s1536_s0, %s868_s18  ;;  %s1331_s18 = scalar_lea.vmem [#allocation6], %s1311_s12 }
  0x22   : > { %v329_v11 = vld [vmem:[%s328_s21] sm:$0xff]  ;;  %s310_s21 = scalar_lea.vmem [#allocation4], %s1311_s12 }
  0x23   : > { %918 = vmatmul.mubr.msk.f32.vlgmr.msra.gmra.mrb[0].mxu0 %vm334_vm3, %v329_v11 }
  0x24   : > { %931 = vmatprep.mubr.msk.f32.mxu0 %vm1167_vm0, %v1168_v6 }
  0x26   : > { %947 = vmatpush3.bf16.xpose.msk.msra.mxu0 %vm942_vm2, %v945_v14 }
  0xf6   : > { %v404_v17 = vpop.f32.mrb[0].mxu0 }
  0xf7   : > { %v426_v18 = vadd.f32 %v870_v15, %v404_v17  ;;  %409 = vrot.lane.b32.xlu0 %v404_v17, %s1169_s20  ;;  %v919_v19 = vpop.f32.mrb[1].mxu0  ;;  %v442_v20 = vadd.f32 %v872_v16, %v404_v17  ;;  %s1337_s20 = sshll.u32 %s1244_s9, 8  ;;  %s1172_s9 = smov [#allocation4]  }
  0xf8   : > { %s1343_s25 = scalar_lea.hbm %s1521_s6, %s1337_s20 }
  0xf9   : > { %925 = vmatmul.mubr.msk.f32.vlgmr.msra.gmra.mrb[0].mxu1 %vm448_vm1, %v442_v20  ;;  %610 = vst.msk [vmem:[%s310_s21] sm:$0xff] %vm448_vm1, %v426_v18 }
  0xfb   : > { %612 = vrot.lane.b32.xlu0 %v404_v17, %s1170_s22 }
 0x169   : > { %v410_v23 = vpop.permute.xlu0 %409 }
 0x16a   : > { %v427_v24 = vadd.f32 %v871_v21, %v410_v23  ;;  %v443_v25 = vadd.f32 %v873_v22, %v410_v23  ;;  %622 = vrot.lane.b32.xlu0 %v410_v23, %s1171_s17  ;;  %614 = vrot.lane.b32.xlu1 %v410_v23, %s1170_s22  ;;  %s673_s22 = sshll.u32 %s310_s21, 4  ;;  %s1345_s22 = int_to_ptr.vmem [resolvable:$true] %s673_s22 }
 0x16b   : > { %s1010_s10 = scalar_lea.vmem %s1345_s22, 256 }
 0x16c   : > { %932 = vmatmul.mubr.msk.f32.vlgmr.msra.gmra.mrb[2].mxu0 %vm448_vm1, %v443_v25  ;;  %611 = vst.msk [vmem:[%s310_s21 + $0x8] sm:$0xff] %vm448_vm1, %v427_v24  ;;  %p1011_p11 = scmp.ne.s32.totalorder %s1345_s22, %s1010_s10 }
 0x16d   : > { %v613_v26 = vpop.permute.xlu0 %612 }
 0x16e   : > { %618 = vst.msk [vmem:[%s1331_s18] sm:$0xff] %vm448_vm1, %v613_v26  ;;  %620 = vrot.lane.b32.xlu1 %v404_v17, %s1171_s17  ;;  %p1012_p12 = pnand %p1011_p11, %p1263_p5  ;;  %s1014_s17 = sshll.u32 %s1172_s9, 4  ;;  %s1015_s17 = int_to_ptr.vmem [resolvable:$false] %s1014_s17 }
 0x16f   : > { %s1016_s0 = scalar_lea.vmem %s1015_s17, 512  ;;  %p1017_p0 = scmp.lt.s32.totalorder %s1345_s22, %s1015_s17 }
 0x170   : > { %p1013_p13 = pneg %p1012_p12  ;;  %p1018_p1 = scmp.lt.s32.totalorder %s1016_s0, %s1010_s10 }
 0x172   : > { %p1019_p2 = por %p1018_p1, %p1017_p0 }
 0x174   : > { %p1020_p3 = pnand %p1019_p2, %p1013_p13 }
 0x176   : > { %1023 = shalt.err (!%p1020_p3)
}
 0x177   : > { %s1024_s21 = scalar_lea.hbm %s1343_s25, 256  ;;  %s1028_s24 = scalar_lea.hbm %s1521_s6, 512 }
 0x178   : > { %p1025_p4 = scmp.ne.s32.totalorder %s1343_s25, %s1024_s21  ;;  %p1029_p9 = scmp.lt.u32.totalorder %s1343_s25, %s1521_s6 }
 0x179   : > { %p1030_p10 = scmp.lt.u32.totalorder %s1028_s24, %s1024_s21  ;;  %p1032_p12 = scmp.lt.u32.totalorder %s1024_s21, %s1343_s25 }
 0x17a   : > { %p1026_p7 = pnand %p1025_p4, %p1263_p5 }
 0x17b   : > { %p1031_p11 = por %p1030_p10, %p1029_p9 }
 0x17c   : > { %p1027_p8 = pneg %p1026_p7 }
 0x17d   : > { %p1033_p13 = por %p1032_p12, %p1031_p11 }
 0x17f   : > { %p1034_p0 = pnand %p1033_p13, %p1027_p8 }
 0x181   : > { %1037 = shalt.err (!%p1034_p0)
}
 0x182   : > { %s1525_s0 = smov 128   ;;  %s1527_s10 = smov 8   ;;  %vm607_vm4 = vcmask 72704  }
 0x183   : > { %949 = dma.vmem_to_hbm [thread:$0]  (%p1263_p5), %s1345_s22, 256, %s1343_s25, %s1347_s13, %s1525_s0, %s1525_s0, %s1527_s10  }
 0x184   : > { %s1375_s21 = scalar_lea.vmem [#allocation2], %s1311_s12  ;;  %s689_s19 = sshll.u32 %s1331_s18, 4  ;;  %s1384_s19 = int_to_ptr.vmem [resolvable:$true] %s689_s19 }
 0x185   : > { %s1381_s23 = scalar_lea.vmem [#allocation7], %s1311_s12  ;;  %s1390_s25 = scalar_lea.hbm %s1522_s7, %s1337_s20 }
 0x186   : > { %s705_s24 = sshll.u32 %s1381_s23, 4  ;;  %s1038_s12 = scalar_lea.vmem %s1384_s19, 256  ;;  %s1396_s24 = int_to_ptr.vmem [resolvable:$true] %s705_s24 }
 0x187   : > { %p1039_p1 = scmp.ne.s32.totalorder %s1384_s19, %s1038_s12  ;;  %s1175_s22 = smov [#allocation6]  }
 0x188   : > { %s1042_s9 = sshll.u32 %s1175_s22, 4  ;;  %s1043_s9 = int_to_ptr.vmem [resolvable:$false] %s1042_s9 }
 0x189   : > { %p1040_p2 = pnand %p1039_p1, %p1263_p5  ;;  %s1044_s17 = scalar_lea.vmem %s1043_s9, 512 }
 0x18a   : > { %p1045_p4 = scmp.lt.s32.totalorder %s1384_s19, %s1043_s9  ;;  %p1046_p7 = scmp.lt.s32.totalorder %s1044_s17, %s1038_s12 }
 0x18b   : > { %p1041_p3 = pneg %p1040_p2 }
 0x18c   : > { %p1047_p8 = por %p1046_p7, %p1045_p4 }
 0x18e   : > { %p1048_p9 = pnand %p1047_p8, %p1041_p3 }
 0x1cc   : > { %v524_v27 = vpop.f32.mrb[0].mxu1 }
 0x1cd   : > { %608 = vst.msk [vmem:[%s1375_s21] sm:$0xff] %vm607_vm4, %v524_v27  ;;  %v926_v28 = vpop.f32.mrb[1].mxu1 }
 0x1dc   : > { %v615_v29 = vpop.permute.xlu1 %614  ;;  %v623_v30 = vpop.permute.xlu0 %622 }
 0x1dd   : > { %619 = vst.msk [vmem:[%s1331_s18 + $0x8] sm:$0xff] %vm448_vm1, %v615_v29  ;;  %627 = vst.msk [vmem:[%s1381_s23 + $0x8] sm:$0xff] %vm448_vm1, %v623_v30 }
 0x1de   : > { %1051 = shalt.err (!%p1048_p9)
}
 0x1df   : > { %s1052_s18 = scalar_lea.hbm %s1390_s25, 256  ;;  %s1056_s22 = scalar_lea.hbm %s1522_s7, 512 }
 0x1e0   : > { %p1053_p10 = scmp.ne.s32.totalorder %s1390_s25, %s1052_s18  ;;  %p1057_p13 = scmp.lt.u32.totalorder %s1390_s25, %s1522_s7 }
 0x1e1   : > { %p1058_p0 = scmp.lt.u32.totalorder %s1056_s22, %s1052_s18  ;;  %p1060_p2 = scmp.lt.u32.totalorder %s1052_s18, %s1390_s25 }
 0x1e2   : > { %p1054_p11 = pnand %p1053_p10, %p1263_p5 }
 0x1e3   : > { %p1059_p1 = por %p1058_p0, %p1057_p13 }
 0x1e4   : > { %p1055_p12 = pneg %p1054_p11 }
 0x1e5   : > { %p1061_p3 = por %p1060_p2, %p1059_p1 }
 0x1e7   : > { %p1062_p4 = pnand %p1061_p3, %p1055_p12 }
 0x1e9   : > { %1065 = shalt.err (!%p1062_p4)
}
 0x1ea   : > { %s1539_s12 = smov 8   ;;  %s1540_s17 = smov 128   ;;  %v621_v31 = vpop.permute.xlu1 %620 }
 0x1eb   : > { %950 = dma.vmem_to_hbm [thread:$0]  (%p1263_p5), %s1384_s19, 256, %s1390_s25, %s1347_s13, %s1540_s17, %s1540_s17, %s1539_s12  }
 0x1ec   : > { %s1427_s10 = scalar_lea.hbm %s1523_s8, %s1337_s20  ;;  %626 = vst.msk [vmem:[%s1381_s23] sm:$0xff] %vm448_vm1, %v621_v31  ;;  %s644_s18 = scalar_lea.sflag [#allocation8], %s1308_s26 }
 0x1ed   : > { %s1066_s22 = scalar_lea.vmem %s1396_s24, 256  ;;  %s1176_s9 = smov [#allocation7]  }
 0x1ee   : > { %p1067_p7 = scmp.ne.s32.totalorder %s1396_s24, %s1066_s22  ;;  %s1070_s2 = sshll.u32 %s1176_s9, 4  ;;  %s1071_s2 = int_to_ptr.vmem [resolvable:$false] %s1070_s2 }
 0x1ef   : > { %s1072_s3 = scalar_lea.vmem %s1071_s2, 512  ;;  %p1073_p10 = scmp.lt.s32.totalorder %s1396_s24, %s1071_s2 }
 0x1f0   : > { %p1068_p8 = pnand %p1067_p7, %p1263_p5  ;;  %p1074_p11 = scmp.lt.s32.totalorder %s1072_s3, %s1066_s22 }
 0x1f2   : > { %p1069_p9 = pneg %p1068_p8  ;;  %p1075_p12 = por %p1074_p11, %p1073_p10 }
 0x1f4   : > { %p1076_p13 = pnand %p1075_p12, %p1069_p9 }
 0x1f6   : > { %1079 = shalt.err (!%p1076_p13)
}
 0x1f7   : > { %s1080_s13 = scalar_lea.hbm %s1427_s10, 256  ;;  %s1084_s25 = scalar_lea.hbm %s1523_s8, 512 }
 0x1f8   : > { %p1081_p0 = scmp.ne.s32.totalorder %s1427_s10, %s1080_s13  ;;  %p1085_p3 = scmp.lt.u32.totalorder %s1427_s10, %s1523_s8 }
 0x1f9   : > { %p1086_p4 = scmp.lt.u32.totalorder %s1084_s25, %s1080_s13  ;;  %p1088_p8 = scmp.lt.u32.totalorder %s1080_s13, %s1427_s10 }
 0x1fa   : > { %p1082_p1 = pnand %p1081_p0, %p1263_p5 }
 0x1fb   : > { %p1087_p7 = por %p1086_p4, %p1085_p3 }
 0x1fc   : > { %p1083_p2 = pneg %p1082_p1 }
 0x1fd   : > { %p1089_p9 = por %p1088_p8, %p1087_p7 }
 0x1ff   : > { %p1090_p10 = pnand %p1089_p9, %p1083_p2 }
 0x201   : > { %1093 = shalt.err (!%p1090_p10)
}
 0x202   : > { %951 = dma.vmem_to_hbm [thread:$0]  (%p1263_p5), %s1396_s24, 256, %s1427_s10, %s644_s18, %s1540_s17, %s1540_s17, %s1539_s12  }
 0x203   : > { %s657_s3 = sshll.u32 %s1375_s21, 4  ;;  %s1465_s9 = scalar_lea.hbm %s1520_s5, %s1337_s20  ;;  %s1459_s3 = int_to_ptr.vmem [resolvable:$true] %s657_s3 }
 0x204   : > { %s629_s13 = scalar_lea.sflag [#allocation3], %s1308_s26  ;;  %s1094_s19 = scalar_lea.vmem %s1459_s3, 256 }
 0x205   : > { %p1095_p11 = scmp.ne.s32.totalorder %s1459_s3, %s1094_s19  ;;  %s1177_s24 = smov [#allocation2]  }
 0x206   : > { %s1098_s10 = sshll.u32 %s1177_s24, 4  ;;  %s1099_s10 = int_to_ptr.vmem [resolvable:$false] %s1098_s10 }
 0x207   : > { %p1096_p12 = pnand %p1095_p11, %p1263_p5  ;;  %s1100_s18 = scalar_lea.vmem %s1099_s10, 512 }
 0x208   : > { %p1101_p0 = scmp.lt.s32.totalorder %s1459_s3, %s1099_s10  ;;  %p1102_p1 = scmp.lt.s32.totalorder %s1100_s18, %s1094_s19 }
 0x209   : > { %p1097_p13 = pneg %p1096_p12 }
 0x20a   : > { %p1103_p2 = por %p1102_p1, %p1101_p0 }
 0x20c   : > { %p1104_p3 = pnand %p1103_p2, %p1097_p13 }
 0x23f   : > { %v603_v32 = vpop.f32.mrb[2].mxu0 }
 0x240   : > { %609 = vst.msk [vmem:[%s1375_s21 + $0x8] sm:$0xff] %vm607_vm4, %v603_v32  ;;  %v933_v33 = vpop.f32.mrb[3].mxu0 }
 0x241   : > { %1107 = shalt.err (!%p1104_p3)
}
 0x242   : > { %s1108_s20 = scalar_lea.hbm %s1465_s9, 256  ;;  %s1112_s25 = scalar_lea.hbm %s1520_s5, 512 }
 0x243   : > { %p1109_p4 = scmp.ne.s32.totalorder %s1465_s9, %s1108_s20  ;;  %p1113_p9 = scmp.lt.u32.totalorder %s1465_s9, %s1520_s5 }
 0x244   : > { %p1114_p10 = scmp.lt.u32.totalorder %s1112_s25, %s1108_s20  ;;  %p1116_p12 = scmp.lt.u32.totalorder %s1108_s20, %s1465_s9 }
 0x245   : > { %p1110_p7 = pnand %p1109_p4, %p1263_p5 }
 0x246   : > { %p1115_p11 = por %p1114_p10, %p1113_p9 }
 0x247   : > { %p1111_p8 = pneg %p1110_p7 }
 0x248   : > { %p1117_p13 = por %p1116_p12, %p1115_p11 }
 0x24a   : > { %p1118_p0 = pnand %p1117_p13, %p1111_p8 }
 0x24c   : > { %1121 = shalt.err (!%p1118_p0)
}
 0x24d   : > { %948 = dma.vmem_to_hbm [thread:$0]  (%p1263_p5), %s1459_s3, 256, %s1465_s9, %s629_s13, %s1540_s17, %s1540_s17, %s1539_s12  }
 0x24e PF: > { %p969_p1 = scmp.ge.s32.totalorder %s1164_s30, 2  ;;  %s720_s0 = sand.u32 1, %s1152_s27  }
 0x24f   : > { %s721_s22 = scalar_lea.sflag [#allocation3], %s720_s0 }
 0x250   : > { %p957_p2 = pnand %p969_p1, %p1267_p6 }
 0x252   : > { %1139 = dma.done.wait (!%p957_p2), %s721_s22, 256  }
 0x253   : > { %1141 = vsyncadd (!%p957_p2), %s721_s22, 4294967040  ;;  %s1541_s15 = sadd.s32 4294967294, %s1164_s30  }
 0x254   : > { %s729_s19 = sand.u32 1, %s1541_s15  }
 0x255   : > { %s730_s24 = scalar_lea.sflag [#allocation5], %s729_s19 }
 0x256   : > { %1143 = dma.done.wait (!%p957_p2), %s730_s24, 512  }
 0x257   : > { %1145 = vsyncadd (!%p957_p2), %s730_s24, 4294966784  ;;  %s748_s26 = scalar_lea.sflag [#allocation8], %s720_s0 }
 0x258   : > { %1147 = dma.done.wait (!%p957_p2), %s748_s26, 256  }
 0x259   : > { %1149 = vsyncadd (!%p957_p2), %s748_s26, 4294967040  ;;  %p25_p5 = scmp.ge.s32.totalorder %s1248_s11, 4   ;;  %s1542_s27 = smov %s1156_s28 }
 0x25a   : > { %s1543_s28 = smov %s1160_s29  ;;  %s1544_s29 = smov %s1261_s14 }
 0x25b   : > { %s1545_s30 = smov %s1248_s11  ;;  %27 = sbr.rel (!%p25_p5) target bundleno = 12 (0xc), region = 124 }
 0x262   :  { %753 = vsyncpa [#allocation3], 1 }
 0x263   :  { %755 = vsyncpa [#allocation3 + $0x1], 1 }
 0x264   :  { %756 = vsyncpa [#allocation5], 1 }
 0x265   :  { %758 = vsyncpa [#allocation5 + $0x1], 1 }
 0x266   :  { %759 = vsyncpa [#allocation8], 1 }
 0x267   :  { %761 = vsyncpa [#allocation8 + $0x1], 1 }

</bundles_post_ra>
